<compile_context>
chip_gen: v7x
topology: tpu7x:2x2x1
jax: 0.10.0
libtpu: 0.0.40
codegen_flags: <defaults>
</compile_context>

<pallas_src>
import functools

import jax
import jax.numpy as jnp
from jax.experimental import pallas as pl
from jax.experimental.pallas import tpu as pltpu

SUBLANE = 8  # f32 sublane multiple


def actor_critic_kernel(x_ref, w_enc_ref, b_enc_ref, w_head_ref, b_head_ref,
                        out_ref, *, n_act):
    # Encoder: Linear + ReLU. x arrives as f32 (no wrapper-side bf16 copy);
    # cast to bf16 in-register right before the MXU matmul, accumulate in f32.
    x_bf16 = x_ref[...].astype(jnp.bfloat16)
    h = jnp.dot(x_bf16, w_enc_ref[...],
                preferred_element_type=jnp.float32) + b_enc_ref[...]
    h = jnp.maximum(h, 0.0)

    # Fused actor+critic head: one lane-dense matmul, one lane-dense output.
    fused = jnp.dot(h.astype(w_head_ref.dtype), w_head_ref[...],
                    preferred_element_type=jnp.float32) + b_head_ref[...]

    col = jax.lax.broadcasted_iota(jnp.int32, fused.shape, dimension=1)

    # Softmax only over the real action lanes; padded lanes -> ~0 probability.
    logits = jnp.where(col < n_act, fused, jnp.float32(-1e30))
    m = jnp.max(logits, axis=-1, keepdims=True)
    e = jnp.exp(logits - m)
    denom = jnp.sum(e, axis=-1, keepdims=True)
    probs = e * pl.reciprocal(denom, approx=True)

    # Pack: lanes [0, n_act) = probs, lane n_act = value, rest ~0. One store.
    out_ref[...] = jnp.where(col == n_act, fused, probs)


def _choose_batch_tiling(B):
    """Returns (b_pad, tile_b). Large batches get 512-row tiles and >= 2 grid
    steps (so v7x's second TensorCore is used); small batches get one tile
    padded to the f32 sublane multiple."""
    if B > 256:
        # Largest tile <= 512 that still yields at least 2 grid steps.
        tile_b = min(512, max(SUBLANE, pl.cdiv(B, 2 * SUBLANE) * SUBLANE))
        b_pad = pl.cdiv(B, tile_b) * tile_b
    else:
        b_pad = max(SUBLANE, pl.cdiv(B, SUBLANE) * SUBLANE)
        tile_b = b_pad
    return b_pad, tile_b


def actor_critic_forward(x_nchw, packed, n_act):
    """x_nchw: [B, C, H, W] float32. Returns (action_prob [B, n_act], state_values [B, 1])."""
    B = x_nchw.shape[0]
    w_enc = packed["w_enc"]
    b_enc = packed["b_enc"]
    w_head = packed["w_head"]
    b_head = packed["b_head"]
    in_dim, h_pad = w_enc.shape
    head_pad = w_head.shape[1]

    # Row-major flatten == torch.flatten(x, 1). Keep f32; the kernel casts.
    x_flat = x_nchw.reshape(B, -1)

    b_pad, tile_b = _choose_batch_tiling(B)
    if b_pad != B:
        x_flat = jnp.pad(x_flat, ((0, b_pad - B), (0, 0)))

    flops = 2 * b_pad * (in_dim * h_pad + h_pad * head_pad)
    bytes_accessed = (x_flat.size * 4            # f32 x read
                      + w_enc.size * 2 + b_enc.size * 4
                      + w_head.size * 2 + b_head.size * 4
                      + b_pad * head_pad * 4)    # f32 fused output
    cost = pl.CostEstimate(flops=flops,
                           transcendentals=b_pad * head_pad,
                           bytes_accessed=bytes_accessed)

    out = pl.pallas_call(
        functools.partial(actor_critic_kernel, n_act=n_act),
        out_shape=jax.ShapeDtypeStruct((b_pad, head_pad), jnp.float32),
        grid_spec=pltpu.PrefetchScalarGridSpec(
            num_scalar_prefetch=0,
            grid=(b_pad // tile_b,),
            in_specs=[
                pl.BlockSpec((tile_b, in_dim), lambda i: (i, 0)),   # x tile (f32)
                pl.BlockSpec((in_dim, h_pad), lambda i: (0, 0)),    # encoder W (bf16, resident)
                pl.BlockSpec((1, h_pad), lambda i: (0, 0)),         # encoder b (f32, resident)
                pl.BlockSpec((h_pad, head_pad), lambda i: (0, 0)),  # fused head W (bf16, resident)
                pl.BlockSpec((1, head_pad), lambda i: (0, 0)),      # fused head b (f32, resident)
            ],
            out_specs=pl.BlockSpec((tile_b, head_pad), lambda i: (i, 0)),
        ),
        compiler_params=pltpu.CompilerParams(
            dimension_semantics=("parallel",)),
        cost_estimate=cost,
    )(x_flat, w_enc, b_enc, w_head, b_head)

    probs = out[:B, :n_act]
    value = out[:B, n_act:n_act + 1]
    return probs, value


def init_params(key, in_dim, hidden, num_actions):
    """Deterministic init mimicking nn.Linear default U(-1/sqrt(fan_in), 1/sqrt(fan_in))."""
    ks = jax.random.split(key, 6)

    def lin(kw, kb, fan_in, fan_out):
        bound = 1.0 / jnp.sqrt(fan_in)
        w = jax.random.uniform(kw, (fan_in, fan_out), jnp.float32, -bound, bound)
        b = jax.random.uniform(kb, (1, fan_out), jnp.float32, -bound, bound)
        return w, b

    w_enc, b_enc = lin(ks[0], ks[1], in_dim, hidden)
    w_act, b_act = lin(ks[2], ks[3], hidden, num_actions)
    w_val, b_val = lin(ks[4], ks[5], hidden, 1)
    return dict(w_enc=w_enc, b_enc=b_enc,
                w_act=w_act, b_act=b_act,
                w_val=w_val, b_val=b_val)


def pack_params(params, n_act, hidden_pad=128, head_pad=128):
    """Zero-pad hidden to 128 lanes, fuse actor+critic heads, cast weights to bf16."""
    w_enc, b_enc = params["w_enc"], params["b_enc"]
    w_act, b_act = params["w_act"], params["b_act"]
    w_val, b_val = params["w_val"], params["b_val"]
    in_dim, hidden = w_enc.shape

    w_enc_p = jnp.zeros((in_dim, hidden_pad), jnp.float32).at[:, :hidden].set(w_enc)
    b_enc_p = jnp.zeros((1, hidden_pad), jnp.float32).at[:, :hidden].set(b_enc)

    # Fused head: cols [0, n_act) = actor, col n_act = critic value, rest zero.
    w_head_p = jnp.zeros((hidden_pad, head_pad), jnp.float32)
    w_head_p = w_head_p.at[:hidden, :n_act].set(w_act)
    w_head_p = w_head_p.at[:hidden, n_act:n_act + 1].set(w_val)
    b_head_p = jnp.zeros((1, head_pad), jnp.float32)
    b_head_p = b_head_p.at[:, :n_act].set(b_act)
    b_head_p = b_head_p.at[:, n_act:n_act + 1].set(b_val)

    return dict(w_enc=w_enc_p.astype(jnp.bfloat16),
                b_enc=b_enc_p,
                w_head=w_head_p.astype(jnp.bfloat16),
                b_head=b_head_p)


if __name__ == "__main__":
    key = jax.random.PRNGKey(0)
    k_x, k_p = jax.random.split(key)

    B, C, H, W = 2, 4, 16, 16          # small bomberman-like board state, NCHW
    HIDDEN = 32
    NUM_ACTIONS = 6                     # UP/DOWN/LEFT/RIGHT/WAIT/BOMB
    # NOTE: at B=2 the call is dispatch/weight-DMA latency bound; batch multiple
    # environment states per call when possible to amortize the ~290 KB weight fetch.

    x = jax.random.normal(k_x, (B, C, H, W), dtype=jnp.float32)
    params = init_params(k_p, C * H * W, HIDDEN, NUM_ACTIONS)
    packed = pack_params(params, NUM_ACTIONS)

    probs, values = actor_critic_forward(x, packed, NUM_ACTIONS)
    jax.block_until_ready((probs, values))

    # Shape / normalization sanity.
    assert probs.shape == (B, NUM_ACTIONS)
    assert values.shape == (B, 1)
    assert bool(jnp.all(jnp.abs(jnp.sum(probs, axis=-1) - 1.0) < 1e-2))

    # Pure-JAX f32 reference of the same forward (tolerances cover bf16 weights
    # + approx reciprocal).
    x_flat = x.reshape(B, -1)
    h_ref = jnp.maximum(x_flat @ params["w_enc"] + params["b_enc"], 0.0)
    probs_ref = jax.nn.softmax(h_ref @ params["w_act"] + params["b_act"], axis=-1)
    value_ref = h_ref @ params["w_val"] + params["b_val"]
    assert bool(jnp.allclose(probs, probs_ref, atol=5e-2))
    assert bool(jnp.allclose(values, value_ref, atol=5e-2, rtol=5e-2))

    # Exercise the large-batch gridded path (512-row tiles, >= 2 parallel grid
    # steps so both v7x TensorCores are used) on a modest batch.
    B2 = 1024
    x2 = jax.random.normal(jax.random.PRNGKey(1), (B2, C, H, W), dtype=jnp.float32)
    probs2, values2 = actor_critic_forward(x2, packed, NUM_ACTIONS)
    jax.block_until_ready((probs2, values2))
    assert probs2.shape == (B2, NUM_ACTIONS)
    assert values2.shape == (B2, 1)
    x2_flat = x2.reshape(B2, -1)
    h2_ref = jnp.maximum(x2_flat @ params["w_enc"] + params["b_enc"], 0.0)
    probs2_ref = jax.nn.softmax(h2_ref @ params["w_act"] + params["b_act"], axis=-1)
    value2_ref = h2_ref @ params["w_val"] + params["b_val"]
    assert bool(jnp.allclose(probs2, probs2_ref, atol=5e-2))
    assert bool(jnp.allclose(values2, value2_ref, atol=5e-2, rtol=5e-2))

    print("KERNEL_OK")
</pallas_src>

<mosaic_0001>
module attributes {stable_mosaic.version = 11 : i64} {
  func.func @actor_critic_kernel(%arg0: i32, %arg1: memref<8x1024xf32, #tpu.memory_space<vmem>>, %arg2: memref<1024x128xbf16, #tpu.memory_space<vmem>>, %arg3: memref<1x128xf32, #tpu.memory_space<vmem>>, %arg4: memref<128x128xbf16, #tpu.memory_space<vmem>>, %arg5: memref<1x128xf32, #tpu.memory_space<vmem>>, %arg6: memref<8x128xf32, #tpu.memory_space<vmem>>) attributes {dimension_semantics = [#tpu.dimension_semantics<parallel>], iteration_bounds = array<i64: 1>, scalar_prefetch = 0 : i64, scratch_operands = 0 : i64, tpu.core_type = #tpu.core_type<tc>, window_params = [{transform_indices = @transform_0, window_bounds = array<i64: 8, 1024>}, {pipeline_mode = #tpu.pipeline_mode<synchronous>, transform_indices = @transform_1, window_bounds = array<i64: 1024, 128>}, {pipeline_mode = #tpu.pipeline_mode<synchronous>, transform_indices = @transform_2, window_bounds = array<i64: 1, 128>}, {pipeline_mode = #tpu.pipeline_mode<synchronous>, transform_indices = @transform_3, window_bounds = array<i64: 128, 128>}, {pipeline_mode = #tpu.pipeline_mode<synchronous>, transform_indices = @transform_4, window_bounds = array<i64: 1, 128>}, {transform_indices = @transform_5, window_bounds = array<i64: 8, 128>}]} {
    %c0 = arith.constant 0 : index
    %c0_0 = arith.constant 0 : index
    %0 = vector.load %arg1[%c0, %c0_0] : memref<8x1024xf32, #tpu.memory_space<vmem>>, vector<8x1024xf32>
    %1 = arith.truncf %0 : vector<8x1024xf32> to vector<8x1024xbf16>
    %c0_1 = arith.constant 0 : index
    %c0_2 = arith.constant 0 : index
    %2 = vector.load %arg2[%c0_1, %c0_2] : memref<1024x128xbf16, #tpu.memory_space<vmem>>, vector<1024x128xbf16>
    %cst = arith.constant dense<0.000000e+00> : vector<8x128xf32>
    %3 = tpu.matmul %1, %2, %cst {dimension_numbers = #tpu.dot_dimension_numbers<[1], [0], [0], [1], [0, 0, 1, 1], [], []>} : vector<8x1024xbf16>, vector<1024x128xbf16>, vector<8x128xf32> -> vector<8x128xf32>
    %c0_3 = arith.constant 0 : index
    %c0_4 = arith.constant 0 : index
    %4 = vector.load %arg3[%c0_3, %c0_4] : memref<1x128xf32, #tpu.memory_space<vmem>>, vector<1x128xf32>
    %5 = vector.broadcast %4 : vector<1x128xf32> to vector<8x128xf32>
    %6 = arith.addf %3, %5 : vector<8x128xf32>
    %cst_5 = arith.constant 0.000000e+00 : f32
    %7 = vector.broadcast %cst_5 : f32 to vector<8x128xf32>
    %8 = arith.maximumf %6, %7 : vector<8x128xf32>
    %9 = arith.truncf %8 : vector<8x128xf32> to vector<8x128xbf16>
    %c0_6 = arith.constant 0 : index
    %c0_7 = arith.constant 0 : index
    %10 = vector.load %arg4[%c0_6, %c0_7] : memref<128x128xbf16, #tpu.memory_space<vmem>>, vector<128x128xbf16>
    %cst_8 = arith.constant dense<0.000000e+00> : vector<8x128xf32>
    %11 = tpu.matmul %9, %10, %cst_8 {dimension_numbers = #tpu.dot_dimension_numbers<[1], [0], [0], [1], [0, 0, 1, 1], [], []>} : vector<8x128xbf16>, vector<128x128xbf16>, vector<8x128xf32> -> vector<8x128xf32>
    %c0_9 = arith.constant 0 : index
    %c0_10 = arith.constant 0 : index
    %12 = vector.load %arg5[%c0_9, %c0_10] : memref<1x128xf32, #tpu.memory_space<vmem>>, vector<1x128xf32>
    %13 = vector.broadcast %12 : vector<1x128xf32> to vector<8x128xf32>
    %14 = arith.addf %11, %13 : vector<8x128xf32>
    %15 = tpu.iota {dimensions = array<i32: 1>} : vector<8x128xi32>
    %c6_i32 = arith.constant 6 : i32
    %16 = vector.broadcast %c6_i32 : i32 to vector<8x128xi32>
    %17 = arith.cmpi slt, %15, %16 : vector<8x128xi32>
    %cst_11 = arith.constant -1.000000e+30 : f32
    %18 = vector.broadcast %cst_11 : f32 to vector<8x128xf32>
    %19 = arith.select %17, %14, %18 : vector<8x128xi1>, vector<8x128xf32>
    %cst_12 = arith.constant dense<0xFF800000> : vector<8xf32>
    %20 = vector.multi_reduction <maximumf>, %19, %cst_12 [1] : vector<8x128xf32> to vector<8xf32>
    %21 = vector.shape_cast %20 : vector<8xf32> to vector<8x1xf32>
    %22 = vector.broadcast %21 : vector<8x1xf32> to vector<8x128xf32>
    %23 = arith.subf %19, %22 : vector<8x128xf32>
    %24 = math.exp %23 : vector<8x128xf32>
    %cst_13 = arith.constant dense<0.000000e+00> : vector<8xf32>
    %25 = vector.multi_reduction <add>, %24, %cst_13 [1] : vector<8x128xf32> to vector<8xf32>
    %26 = vector.shape_cast %25 : vector<8xf32> to vector<8x1xf32>
    %27 = tpu.reciprocal %26 {approx = true} : vector<8x1xf32> -> vector<8x1xf32>
    %28 = vector.broadcast %27 : vector<8x1xf32> to vector<8x128xf32>
    %29 = arith.mulf %24, %28 : vector<8x128xf32>
    %c6_i32_14 = arith.constant 6 : i32
    %30 = vector.broadcast %c6_i32_14 : i32 to vector<8x128xi32>
    %31 = arith.cmpi eq, %15, %30 : vector<8x128xi32>
    %32 = arith.select %31, %14, %29 : vector<8x128xi1>, vector<8x128xf32>
    %c0_15 = arith.constant 0 : index
    %c0_16 = arith.constant 0 : index
    %33 = vector.load %arg6[%c0_15, %c0_16] : memref<8x128xf32, #tpu.memory_space<vmem>>, vector<8x128xf32>
    tpu.vector_store %arg6[%c0_15, %c0_16], %32 {strides = array<i32>} : memref<8x128xf32, #tpu.memory_space<vmem>>, vector<8x128xf32>,
    return
  }
  func.func @transform_0(%arg0: i32) -> (i32, i32) {
    %c0_i32 = arith.constant 0 : i32
    %c0_i32_0 = arith.constant 0 : i32
    return %arg0, %c0_i32 : i32, i32
  }
  func.func @transform_1(%arg0: i32) -> (i32, i32) {
    %c0_i32 = arith.constant 0 : i32
    %c0_i32_0 = arith.constant 0 : i32
    %c0_i32_1 = arith.constant 0 : i32
    return %c0_i32, %c0_i32_0 : i32, i32
  }
  func.func @transform_2(%arg0: i32) -> (i32, i32) {
    %c0_i32 = arith.constant 0 : i32
    %c0_i32_0 = arith.constant 0 : i32
    %c0_i32_1 = arith.constant 0 : i32
    return %c0_i32, %c0_i32_0 : i32, i32
  }
  func.func @transform_3(%arg0: i32) -> (i32, i32) {
    %c0_i32 = arith.constant 0 : i32
    %c0_i32_0 = arith.constant 0 : i32
    %c0_i32_1 = arith.constant 0 : i32
    return %c0_i32, %c0_i32_0 : i32, i32
  }
  func.func @transform_4(%arg0: i32) -> (i32, i32) {
    %c0_i32 = arith.constant 0 : i32
    %c0_i32_0 = arith.constant 0 : i32
    %c0_i32_1 = arith.constant 0 : i32
    return %c0_i32, %c0_i32_0 : i32, i32
  }
  func.func @transform_5(%arg0: i32) -> (i32, i32) {
    %c0_i32 = arith.constant 0 : i32
    %c0_i32_0 = arith.constant 0 : i32
    return %arg0, %c0_i32 : i32, i32
  }
}

</mosaic_0001>

<bundles_post_ra>
// kernel: tpu_custom_call.1
= control target key start
LH: loop header
LB: loop body
LE: loop exit
PB: predicated region body
PF: predicated region fallthrough
CT: control target
= control target key end

     0   :  { %10 = vsyncpa [#allocation3], 0  ;;  %s1368_s0 = inlined_call_operand.hbm [shape: f32[8,1024], index: 0, kind: input, shape index: {}]   ;;  %s1369_s1 = inlined_call_operand.hbm [shape: bf16[1024,128], index: 1, kind: input, shape index: {}]   ;;  %s1370_s2 = inlined_call_operand.vmem [shape: f32[1,128], index: 2, kind: input, shape index: {}]   ;;  %s1371_s3 = inlined_call_operand.hbm [shape: bf16[128,128], index: 3, kind: input, shape index: {}]   ;;  %s1372_s4 = inlined_call_operand.vmem [shape: f32[1,128], index: 4, kind: input, shape index: {}]   ;;  %s1373_s5 = inlined_call_operand.hbm [shape: f32[8,128], index: 5, kind: output, shape index: {}]  }
   0x1   :  { %11 = vsyncpa [#allocation6], 0 }
   0x2   :  { %12 = vsyncpa [#allocation4], 0  ;;  %s1270_s18 = smov [#allocation5]   ;;  %s1176_s22 = scalar_lea.hbm %s1369_s1, 8192 }
   0x3   :  { %s28_s19 = sshll.u32 %s1270_s18, 4  ;;  %p1177_p0 = scmp.ne.s32.totalorder %s1369_s1, %s1176_s22  ;;  %s29_s19 = int_to_ptr.vmem [resolvable:$true] %s28_s19 }
   0x4   :  { %p1180_p1 = scmp.lt.u32.totalorder %s1176_s22, %s1369_s1 }
   0x6   :  { %p1182_p2 = pnand %p1180_p1, %p1177_p0 }
   0x8   :  { %1185 = shalt.err (!%p1182_p2)
}
   0x9   :  { %s1186_s27 = scalar_lea.vmem %s29_s19, 8192  ;;  %p1191_p4 = scmp.lt.s32.totalorder %s29_s19, %s29_s19 }
   0xa   :  { %p1187_p3 = scmp.ne.s32.totalorder %s29_s19, %s1186_s27  ;;  %p1192_p5 = scmp.lt.s32.totalorder %s1186_s27, %s1186_s27 }
   0xc   :  { %p1193_p6 = por %p1192_p5, %p1191_p4 }
   0xe   :  { %p1194_p7 = pnand %p1193_p6, %p1187_p3 }
  0x10   :  { %1197 = shalt.err (!%p1194_p7)
}
  0x11   :  { %s1271_s28 = smov 64   ;;  %s1272_s29 = smov 4  }
  0x12   :  { %34 = dma.hbm_to_vmem [thread:$0]  %s1369_s1, 8192, %s29_s19, [#allocation6], %s1271_s28, %s1271_s28, %s1272_s29  }
  0x13   :  { %s1273_s7 = smov [#allocation2]   ;;  %s1274_s9 = smov [#allocation7]  }
  0x14   :  { %s19_s8 = sshll.u32 %s1273_s7, 4  ;;  %s42_s10 = sshll.u32 %s1274_s9, 4  ;;  %s20_s8 = int_to_ptr.vmem [resolvable:$true] %s19_s8  ;;  %s43_s10 = int_to_ptr.vmem [resolvable:$true] %s42_s10 }
  0x15   :  { %s1198_s13 = scalar_lea.hbm %s1368_s0, 1024 }
  0x16   :  { %p1199_p8 = scmp.ne.s32.totalorder %s1368_s0, %s1198_s13  ;;  %p1202_p9 = scmp.lt.u32.totalorder %s1198_s13, %s1368_s0 }
  0x18   :  { %p1204_p10 = pnand %p1202_p9, %p1199_p8 }
  0x1a   :  { %1207 = shalt.err (!%p1204_p10)
}
  0x1b   :  { %s1208_s1 = scalar_lea.vmem %s20_s8, 1024  ;;  %p1213_p12 = scmp.lt.s32.totalorder %s20_s8, %s20_s8 }
  0x1c   :  { %p1209_p11 = scmp.ne.s32.totalorder %s20_s8, %s1208_s1  ;;  %p1214_p13 = scmp.lt.s32.totalorder %s1208_s1, %s1208_s1 }
  0x1e   :  { %p1215_p0 = por %p1214_p13, %p1213_p12 }
  0x20   :  { %p1216_p1 = pnand %p1215_p0, %p1209_p11 }
  0x22   :  { %1219 = shalt.err (!%p1216_p1)
}
  0x23   :  { %22 = dma.hbm_to_vmem [thread:$0]  %s1368_s0, 1024, %s20_s8, [#allocation3]  }
  0x24   :  { %s1220_s22 = scalar_lea.hbm %s1371_s3, 1024 }
  0x25   :  { %p1221_p2 = scmp.ne.s32.totalorder %s1371_s3, %s1220_s22  ;;  %p1224_p3 = scmp.lt.u32.totalorder %s1220_s22, %s1371_s3 }
  0x27   :  { %p1226_p4 = pnand %p1224_p3, %p1221_p2 }
  0x29   :  { %1229 = shalt.err (!%p1226_p4)
}
  0x2a   :  { %s1230_s27 = scalar_lea.vmem %s43_s10, 1024  ;;  %p1235_p6 = scmp.lt.s32.totalorder %s43_s10, %s43_s10 }
  0x2b   :  { %p1231_p5 = scmp.ne.s32.totalorder %s43_s10, %s1230_s27  ;;  %p1236_p7 = scmp.lt.s32.totalorder %s1230_s27, %s1230_s27 }
  0x2d   :  { %p1237_p8 = por %p1236_p7, %p1235_p6 }
  0x2f   :  { %p1238_p9 = pnand %p1237_p8, %p1231_p5 }
  0x31   :  { %1241 = shalt.err (!%p1238_p9)
}
  0x32   :  { %48 = dma.hbm_to_vmem [thread:$0]  %s1371_s3, 1024, %s43_s10, [#allocation6], %s1271_s28, %s1271_s28, %s1272_s29  }
  0x33   :  { %1264 = dma.done.wait [#allocation3], 1024  }
  0x34   :  { %1265 = vsyncadd [#allocation3], 4294966272 }
  0x35   :  { %1266 = dma.done.wait [#allocation6], 9216  }
  0x36   :  { %1267 = vsyncadd [#allocation6], 4294958080  ;;  %v1100_v0 = vld [vmem:[#allocation5 + $0x40] sm:$0xff]   ;;  %v1104_v4 = vld [vmem:[#allocation5 + $0x48] sm:$0xff]   ;;  %vm1276_vm0 = vmmov 0   ;;  %s1277_s6 = smov [#allocation8]  }
  0x37   :  { %v1101_v1 = vld [vmem:[#allocation5 + $0xc0] sm:$0xff]   ;;  %975 = vmatprep.subr.bf16.mxu0 %v1100_v0  ;;  %v1105_v5 = vld [vmem:[#allocation5 + $0xc8] sm:$0xff]   ;;  %v1108_v8 = vld [vmem:[#allocation5 + $0x50] sm:$0xff]   ;;  %s891_s7 = sshll.u32 %s1277_s6, 4  ;;  %s892_s7 = int_to_ptr.vmem [resolvable:$true] %s891_s7 }
  0x38   :  { %v1102_v2 = vld [vmem:[#allocation5] sm:$0xff]   ;;  %997 = vmatprep.subr.bf16.mxu1 %v1101_v1  ;;  %v1106_v6 = vld [vmem:[#allocation5 + $0x8] sm:$0xff]   ;;  %v1109_v9 = vld [vmem:[#allocation5 + $0xd0] sm:$0xff]   ;;  %p1247_p11 = scmp.lt.s32.totalorder %s892_s7, %s892_s7 }
  0x39   :  { %v1103_v3 = vld [vmem:[#allocation5 + $0x80] sm:$0xff]   ;;  %976 = vmatpush3.bf16.msra.mxu0 %v1102_v2  ;;  %v1107_v7 = vld [vmem:[#allocation5 + $0x88] sm:$0xff]   ;;  %v1110_v10 = vld [vmem:[#allocation5 + $0x10] sm:$0xff]  }
  0x3a   :  { %998 = vmatpush3.bf16.msra.mxu1 %v1103_v3  ;;  %977 = vmatprep.subr.bf16.mxu0 %v1104_v4  ;;  %v1111_v11 = vld [vmem:[#allocation5 + $0x90] sm:$0xff]   ;;  %v1112_v12 = vld [vmem:[#allocation5 + $0x58] sm:$0xff]   ;;  %v1116_v16 = vld [vmem:[#allocation5 + $0x60] sm:$0xff]  }
  0x3b   :  { %999 = vmatprep.subr.bf16.mxu1 %v1105_v5  ;;  %v1113_v13 = vld [vmem:[#allocation5 + $0xd8] sm:$0xff]   ;;  %v1117_v17 = vld [vmem:[#allocation5 + $0xe0] sm:$0xff]   ;;  %v1120_v20 = vld [vmem:[#allocation5 + $0x68] sm:$0xff]  }
  0x3c   :  { %v1114_v14 = vld [vmem:[#allocation5 + $0x18] sm:$0xff]   ;;  %v1118_v18 = vld [vmem:[#allocation5 + $0x20] sm:$0xff]   ;;  %v1121_v21 = vld [vmem:[#allocation5 + $0xe8] sm:$0xff]  }
  0x3d   :  { %978 = vmatpush3.bf16.msra.mxu0 %v1106_v6  ;;  %v1115_v15 = vld [vmem:[#allocation5 + $0x98] sm:$0xff]   ;;  %v1119_v19 = vld [vmem:[#allocation5 + $0xa0] sm:$0xff]   ;;  %v1122_v22 = vld [vmem:[#allocation5 + $0x28] sm:$0xff]  }
  0x3e   :  { %1000 = vmatpush3.bf16.msra.mxu1 %v1107_v7  ;;  %979 = vmatprep.subr.bf16.mxu0 %v1108_v8  ;;  %v1123_v23 = vld [vmem:[#allocation5 + $0xa8] sm:$0xff]   ;;  %v1124_v24 = vld [vmem:[#allocation5 + $0x70] sm:$0xff]   ;;  %v1128_v28 = vld [vmem:[#allocation5 + $0x78] sm:$0xff]  }
  0x3f   :  { %1001 = vmatprep.subr.bf16.mxu1 %v1109_v9  ;;  %v1125_v25 = vld [vmem:[#allocation5 + $0xf0] sm:$0xff]   ;;  %v1129_v29 = vld [vmem:[#allocation5 + $0xf8] sm:$0xff]   ;;  %v62_v32 = vld [vmem:[#allocation2 + $0x8] sm:$0xff] }
  0x40   :  { %v1126_v26 = vld [vmem:[#allocation5 + $0x30] sm:$0xff]   ;;  %v1130_v30 = vld [vmem:[#allocation5 + $0x38] sm:$0xff]   ;;  %v61_v34 = vld [vmem:[#allocation2] sm:$0xff]  ;;  %v70_v35 = vpack.c.bf16 %v62_v32, %v62_v32 }
  0x41   :  { %980 = vmatpush3.bf16.msra.mxu0 %v1110_v10  ;;  %v1127_v27 = vld [vmem:[#allocation5 + $0xb0] sm:$0xff]   ;;  %v1131_v31 = vld [vmem:[#allocation5 + $0xb8] sm:$0xff]   ;;  %v69_v37 = vpack.c.bf16 %v61_v34, %v61_v34  ;;  %v1132_v40 = vld [vmem:[#allocation5 + $0x140] sm:$0xff]  }
  0x42   :  { %1002 = vmatpush3.bf16.msra.mxu1 %v1111_v11  ;;  %981 = vmatprep.subr.bf16.mxu0 %v1112_v12  ;;  %v64_v33 = vld [vmem:[#allocation2 + $0x18] sm:$0xff]  ;;  %v63_v38 = vld [vmem:[#allocation2 + $0x10] sm:$0xff]  ;;  %v1133_v41 = vld [vmem:[#allocation5 + $0x1c0] sm:$0xff]  }
  0x43   :  { %1003 = vmatprep.subr.bf16.mxu1 %v1113_v13  ;;  %v72_v36 = vpack.c.bf16 %v64_v33, %v64_v33  ;;  %v71_v39 = vpack.c.bf16 %v63_v38, %v63_v38  ;;  %628 = vmatprep.mubr.bf16.mxu0 %v70_v35  ;;  %v1134_v42 = vld [vmem:[#allocation5 + $0x100] sm:$0xff]   ;;  %v1136_v44 = vld [vmem:[#allocation5 + $0x148] sm:$0xff]   ;;  %v1140_v48 = vld [vmem:[#allocation5 + $0x150] sm:$0xff]  }
  0x44   :  { %v1135_v43 = vld [vmem:[#allocation5 + $0x180] sm:$0xff]   ;;  %v1137_v45 = vld [vmem:[#allocation5 + $0x1c8] sm:$0xff]   ;;  %v1141_v49 = vld [vmem:[#allocation5 + $0x1d0] sm:$0xff]  }
  0x45   :  { %982 = vmatpush3.bf16.msra.mxu0 %v1114_v14  ;;  %668 = vmatprep.mubr.bf16.mxu1 %v72_v36  ;;  %v1138_v46 = vld [vmem:[#allocation5 + $0x108] sm:$0xff]   ;;  %v1142_v50 = vld [vmem:[#allocation5 + $0x110] sm:$0xff]   ;;  %v1144_v52 = vld [vmem:[#allocation5 + $0x158] sm:$0xff]  }
  0x46   :  { %1004 = vmatpush3.bf16.msra.mxu1 %v1115_v15  ;;  %983 = vmatprep.subr.bf16.mxu0 %v1116_v16  ;;  %v1139_v47 = vld [vmem:[#allocation5 + $0x188] sm:$0xff]   ;;  %v1143_v51 = vld [vmem:[#allocation5 + $0x190] sm:$0xff]   ;;  %v1145_v53 = vld [vmem:[#allocation5 + $0x1d8] sm:$0xff]  }
  0x47   :  { %1005 = vmatprep.subr.bf16.mxu1 %v1117_v17  ;;  %v1146_v54 = vld [vmem:[#allocation5 + $0x118] sm:$0xff]   ;;  %v1148_v56 = vld [vmem:[#allocation5 + $0x160] sm:$0xff]   ;;  %v1152_v60 = vld [vmem:[#allocation5 + $0x168] sm:$0xff]   ;;  %v1275_v17 = vmov 0.0  }
  0x48   :  { %v1147_v55 = vld [vmem:[#allocation5 + $0x198] sm:$0xff]   ;;  %v1149_v57 = vld [vmem:[#allocation5 + $0x1e0] sm:$0xff]   ;;  %v1153_v61 = vld [vmem:[#allocation5 + $0x1e8] sm:$0xff]  }
  0x49   :  { %984 = vmatpush3.bf16.msra.mxu0 %v1118_v18  ;;  %v1150_v58 = vld [vmem:[#allocation5 + $0x120] sm:$0xff]   ;;  %v1154_v62 = vld [vmem:[#allocation5 + $0x128] sm:$0xff]   ;;  %v1156_v0 = vld [vmem:[#allocation5 + $0x170] sm:$0xff]  }
  0x4a   :  { %1006 = vmatpush3.bf16.msra.mxu1 %v1119_v19  ;;  %985 = vmatprep.subr.bf16.mxu0 %v1120_v20  ;;  %v1151_v59 = vld [vmem:[#allocation5 + $0x1a0] sm:$0xff]   ;;  %v1155_v63 = vld [vmem:[#allocation5 + $0x1a8] sm:$0xff]   ;;  %v1157_v1 = vld [vmem:[#allocation5 + $0x1f0] sm:$0xff]  }
  0x4b   :  { %1007 = vmatprep.subr.bf16.mxu1 %v1121_v21  ;;  %v1158_v2 = vld [vmem:[#allocation5 + $0x130] sm:$0xff]   ;;  %v1160_v4 = vld [vmem:[#allocation5 + $0x178] sm:$0xff]   ;;  %v66_v8 = vld [vmem:[#allocation2 + $0x28] sm:$0xff] }
  0x4c   :  { %v1159_v3 = vld [vmem:[#allocation5 + $0x1b0] sm:$0xff]   ;;  %v1161_v5 = vld [vmem:[#allocation5 + $0x1f8] sm:$0xff]   ;;  %v74_v10 = vpack.c.bf16 %v66_v8, %v66_v8  ;;  %v65_v12 = vld [vmem:[#allocation2 + $0x20] sm:$0xff] }
  0x4d   :  { %986 = vmatpush3.bf16.msra.mxu0 %v1122_v22  ;;  %v1162_v6 = vld [vmem:[#allocation5 + $0x138] sm:$0xff]   ;;  %v67_v13 = vld [vmem:[#allocation2 + $0x30] sm:$0xff]  ;;  %v73_v14 = vpack.c.bf16 %v65_v12, %v65_v12  ;;  %v1164_v16 = vld [vmem:[#allocation7] sm:$0xff]  }
  0x4e   :  { %1008 = vmatpush3.bf16.msra.mxu1 %v1123_v23  ;;  %987 = vmatprep.subr.bf16.mxu0 %v1124_v24  ;;  %v1163_v7 = vld [vmem:[#allocation5 + $0x1b8] sm:$0xff]   ;;  %v75_v15 = vpack.c.bf16 %v67_v13, %v67_v13  ;;  %v1165_v18 = vld [vmem:[#allocation7 + $0x8] sm:$0xff]   ;;  %v1166_v19 = vld [vmem:[#allocation7 + $0x10] sm:$0xff]  }
  0x4f   :  { %1009 = vmatprep.subr.bf16.mxu1 %v1125_v25  ;;  %v68_v9 = vld [vmem:[#allocation2 + $0x38] sm:$0xff]  ;;  %v1168_v21 = vld [vmem:[#allocation7 + $0x20] sm:$0xff]   ;;  %v1169_v22 = vld [vmem:[#allocation7 + $0x28] sm:$0xff]  }
  0x50   :  { %v76_v11 = vpack.c.bf16 %v68_v9, %v68_v9  ;;  %v1167_v20 = vld [vmem:[#allocation7 + $0x18] sm:$0xff]   ;;  %v1170_v23 = vld [vmem:[#allocation7 + $0x30] sm:$0xff]  }
  0x51   :  { %988 = vmatpush3.bf16.msra.mxu0 %v1126_v26  ;;  %v1171_v24 = vld [vmem:[#allocation7 + $0x38] sm:$0xff]  }
  0x52   :  { %1010 = vmatpush3.bf16.msra.mxu1 %v1127_v27  ;;  %989 = vmatprep.subr.bf16.mxu0 %v1128_v28  ;;  %v901_v27 = vld [vmem:[%s1370_s2] ss:$0 sm:$0xff] }
  0x53   :  { %1011 = vmatprep.subr.bf16.mxu1 %v1129_v29 }
  0x55   :  { %990 = vmatpush3.bf16.msra.mxu0 %v1130_v30 }
  0x56   :  { %1012 = vmatpush3.bf16.msra.mxu1 %v1131_v31  ;;  %1019 = vmatprep.subr.bf16.mxu0 %v1132_v40 }
  0x57   :  { %1041 = vmatprep.subr.bf16.mxu1 %v1133_v41 }
  0x58   :  { %629 = vmatmul.mubr.bf16.vlgmr.msra.gmra.mrb[0].mxu0 %v69_v37 }
  0x59   :  { %669 = vmatmul.mubr.bf16.vlgmr.msra.gmra.mrb[0].mxu1 %v71_v39  ;;  %1020 = vmatpush3.bf16.msra.mxu0 %v1134_v42 }
  0x5a   :  { %1042 = vmatpush3.bf16.msra.mxu1 %v1135_v43  ;;  %1021 = vmatprep.subr.bf16.mxu0 %v1136_v44 }
  0x5b   :  { %1043 = vmatprep.subr.bf16.mxu1 %v1137_v45  ;;  %708 = vmatprep.mubr.bf16.mxu0 %v74_v10 }
  0x5c   :  { %748 = vmatprep.mubr.bf16.mxu1 %v76_v11 }
  0x5d   :  { %1022 = vmatpush3.bf16.msra.mxu0 %v1138_v46 }
  0x5e   :  { %1044 = vmatpush3.bf16.msra.mxu1 %v1139_v47  ;;  %1023 = vmatprep.subr.bf16.mxu0 %v1140_v48 }
  0x5f   :  { %1045 = vmatprep.subr.bf16.mxu1 %v1141_v49 }
  0x61   :  { %1024 = vmatpush3.bf16.msra.mxu0 %v1142_v50 }
  0x62   :  { %1046 = vmatpush3.bf16.msra.mxu1 %v1143_v51  ;;  %1025 = vmatprep.subr.bf16.mxu0 %v1144_v52  ;;  %v869_v52 = vlaneseq }
  0x63   :  { %1047 = vmatprep.subr.bf16.mxu1 %v1145_v53 }
  0x64   :  { %v870_v53 = vand.u32 127, %v869_v52 }
  0x65   :  { %1026 = vmatpush3.bf16.msra.mxu0 %v1146_v54  ;;  %v966_v54 = vld [vmem:[%s1372_s4] ss:$0 sm:$0xff]  ;;  %s1242_s4 = scalar_lea.vmem %s892_s7, 128 }
  0x66   :  { %1048 = vmatpush3.bf16.msra.mxu1 %v1147_v55  ;;  %1027 = vmatprep.subr.bf16.mxu0 %v1148_v56  ;;  %vm871_vm1 = vcmp.lt.s32.totalorder %v870_v53, 6  ;;  %vm882_vm2 = vcmp.eq.s32.totalorder %v870_v53, 6  ;;  %p1243_p10 = scmp.ne.s32.totalorder %s892_s7, %s1242_s4  ;;  %p1248_p12 = scmp.lt.s32.totalorder %s1242_s4, %s1242_s4 }
  0x67   :  { %1049 = vmatprep.subr.bf16.mxu1 %v1149_v57 }
  0x68   :  { %p1249_p13 = por %p1248_p12, %p1247_p11 }
  0x69   :  { %1028 = vmatpush3.bf16.msra.mxu0 %v1150_v58 }
  0x6a   :  { %1050 = vmatpush3.bf16.msra.mxu1 %v1151_v59  ;;  %1029 = vmatprep.subr.bf16.mxu0 %v1152_v60  ;;  %p1250_p0 = pnand %p1249_p13, %p1243_p10 }
  0x6b   :  { %1051 = vmatprep.subr.bf16.mxu1 %v1153_v61 }
  0x6d   :  { %1030 = vmatpush3.bf16.msra.mxu0 %v1154_v62 }
  0x6e   :  { %1052 = vmatpush3.bf16.msra.mxu1 %v1155_v63  ;;  %1031 = vmatprep.subr.bf16.mxu0 %v1156_v0 }
  0x6f   :  { %1053 = vmatprep.subr.bf16.mxu1 %v1157_v1 }
  0x71   :  { %1032 = vmatpush3.bf16.msra.mxu0 %v1158_v2 }
  0x72   :  { %1054 = vmatpush3.bf16.msra.mxu1 %v1159_v3  ;;  %1033 = vmatprep.subr.bf16.mxu0 %v1160_v4 }
  0x73   :  { %1055 = vmatprep.subr.bf16.mxu1 %v1161_v5 }
  0x75   :  { %1034 = vmatpush3.bf16.msra.mxu0 %v1162_v6 }
  0x76   :  { %1056 = vmatpush3.bf16.msra.mxu1 %v1163_v7  ;;  %1072 = vmatprep.subr.bf16.mxu0 %v1275_v17 }
  0x78   :  { %709 = vmatmul.mubr.bf16.vlgmr.msra.gmra.mrb[4].mxu0 %v73_v14 }
  0x79   :  { %749 = vmatmul.mubr.bf16.vlgmr.msra.gmra.mrb[4].mxu1 %v75_v15  ;;  %1073 = vmatpush3.bf16.msra.mxu0 %v1164_v16 }
  0x7a   :  { %1074 = vmatprep.subr.bf16.mxu0 %v1275_v17  ;;  %1088 = vmatprep.mubr.msk.bf16.mxu0 %vm1276_vm0, %v1275_v17 }
  0x7d   :  { %1075 = vmatpush3.bf16.msra.mxu0 %v1165_v18 }
  0x7e   :  { %1076 = vmatprep.subr.bf16.mxu0 %v1275_v17 }
  0x81   :  { %1077 = vmatpush3.bf16.msra.mxu0 %v1166_v19 }
  0x82   :  { %1078 = vmatprep.subr.bf16.mxu0 %v1275_v17 }
  0x85   :  { %1079 = vmatpush3.bf16.msra.mxu0 %v1167_v20 }
  0x86   :  { %1080 = vmatprep.subr.bf16.mxu0 %v1275_v17 }
  0x89   :  { %1081 = vmatpush3.bf16.msra.mxu0 %v1168_v21 }
  0x8a   :  { %1082 = vmatprep.subr.bf16.mxu0 %v1275_v17 }
  0x8d   :  { %1083 = vmatpush3.bf16.msra.mxu0 %v1169_v22 }
  0x8e   :  { %1084 = vmatprep.subr.bf16.mxu0 %v1275_v17 }
  0x91   :  { %1085 = vmatpush3.bf16.msra.mxu0 %v1170_v23 }
  0x92   :  { %1086 = vmatprep.subr.bf16.mxu0 %v1275_v17 }
  0x95   :  { %1087 = vmatpush3.bf16.msra.mxu0 %v1171_v24 }
 0x12b   :  { %v991_v25 = vpop.f32.mrb[0].mxu0 }
 0x12c   :  { %v1013_v26 = vpop.f32.mrb[0].mxu1  ;;  %v992_v28 = vpop.f32.mrb[1].mxu0 }
 0x12d   :  { %v1014_v29 = vpop.f32.mrb[1].mxu1  ;;  %v993_v30 = vadd.f32 %v992_v28, %v991_v25  ;;  %v994_v32 = vpop.f32.mrb[2].mxu0 }
 0x12e   :  { %v1015_v31 = vadd.f32 %v1014_v29, %v1013_v26  ;;  %v1016_v33 = vpop.f32.mrb[2].mxu1  ;;  %v995_v34 = vpop.f32.mrb[3].mxu0 }
 0x12f   :  { %v1017_v35 = vpop.f32.mrb[3].mxu1  ;;  %v631_v36 = vadd.f32 %v993_v30, %v901_v27 }
 0x131   :  { %v671_v37 = vadd.f32 %v1015_v31, %v631_v36 }
 0x14b   :  { %v1035_v38 = vpop.f32.mrb[4].mxu0 }
 0x14c   :  { %v1057_v39 = vpop.f32.mrb[4].mxu1  ;;  %v1036_v40 = vpop.f32.mrb[5].mxu0 }
 0x14d   :  { %v1037_v41 = vadd.f32 %v1036_v40, %v1035_v38  ;;  %v1058_v42 = vpop.f32.mrb[5].mxu1  ;;  %v1038_v43 = vpop.f32.mrb[6].mxu0 }
 0x14e   :  { %v1059_v44 = vadd.f32 %v1058_v42, %v1057_v39  ;;  %v1060_v45 = vpop.f32.mrb[6].mxu1  ;;  %v1039_v46 = vpop.f32.mrb[7].mxu0 }
 0x14f   :  { %v711_v47 = vadd.f32 %v1037_v41, %v671_v37  ;;  %v1061_v48 = vpop.f32.mrb[7].mxu1 }
 0x151   :  { %v751_v49 = vadd.f32 %v1059_v44, %v711_v47 }
 0x153   :  { %v756_v50 = vmax.f32 %v751_v49, 0.0 }
 0x155   :  { %v757_v51 = vpack.c.bf16 %v756_v50, %v756_v50 }
 0x157   :  { %1089 = vmatmul.mubr.bf16.vlgmr.msra.gmra.mrb[8].mxu0 %v757_v51 }
 0x22a   :  { %v863_v55 = vpop.f32.mrb[8].mxu0 }
 0x22b   :  { %v864_v56 = vadd.f32 %v966_v54, %v863_v55  ;;  %v1090_v57 = vpop.f32.mrb[9].mxu0 }
 0x22c   :  { %v866_v58 = vpop.f32.mrb[10].mxu0 }
 0x22d   :  { %v1091_v59 = vpop.f32.mrb[11].mxu0  ;;  %v872_v60 = vsel %vm871_vm1, %v864_v56, -1e+30 }
 0x22e   :  { %873 = vmax.xlane.f32.xlu0 %v872_v60 }
 0x2bb   :  { %v874_v61 = vpop.xlane.xlu0 %873 }
 0x2bc   :  { %v875_v62 = vsub.f32 %v872_v60, %v874_v61 }
 0x2be   :  { %v876_v63 = vmul.f32 1.442695, %v875_v62 }
 0x2c0   :  { %1172 = vpow2.f32 %v876_v63 }
 0x2ca   :  { %v1173_v0 = vpop.eup %1172 }
 0x2cb   :  { %878 = vadd.xlane.f32.xlu0 %v1173_v0 }
 0x358   :  { %v879_v1 = vpop.xlane.xlu0 %878 }
 0x359   :  { %1174 = vrcp.f32 %v879_v1 }
 0x363   :  { %v1175_v2 = vpop.eup %1174 }
 0x364   :  { %v881_v3 = vmul.f32 %v1175_v2, %v1173_v0 }
 0x366   :  { %v883_v4 = vsel %vm882_vm2, %v864_v56, %v881_v3 }
 0x367   :  { %884 = vst [vmem:[#allocation8] sm:$0xff] %v883_v4 }
 0x368   :  { %1253 = shalt.err (!%p1250_p0)
}
 0x369   :  { %s1254_s10 = scalar_lea.hbm %s1373_s5, 128 }
 0x36a   :  { %p1255_p1 = scmp.ne.s32.totalorder %s1373_s5, %s1254_s10  ;;  %p1258_p2 = scmp.lt.u32.totalorder %s1254_s10, %s1373_s5 }
 0x36c   :  { %p1260_p3 = pnand %p1258_p2, %p1255_p1 }
 0x36e   :  { %1263 = shalt.err (!%p1260_p3)
}
 0x36f   :  { %894 = dma.vmem_to_hbm [thread:$0]  %s892_s7, 128, %s1373_s5, [#allocation4]  }
 0x370   :  { %1268 = dma.done.wait [#allocation4], 128  }
 0x371   :  { %1269 = vsyncadd [#allocation4], 4294967168 }
 0x372   :  { %898 = vsyncpa [#allocation3], 1 }
 0x373   :  { %899 = vsyncpa [#allocation6], 1 }
 0x374   :  { %900 = vsyncpa [#allocation4], 1 }

</bundles_post_ra>
